<compile_context>
chip_gen: v7x
topology: tpu7x:2x2x1
jax: 0.10.0
libtpu: 0.0.40
codegen_flags: <defaults>
</compile_context>

<pallas_src>
import jax
import jax.numpy as jnp
from jax import lax
from jax.experimental import pallas as pl
from jax.experimental.pallas import tpu as pltpu

HIDDEN = 32            # nn.LSTM(hidden_size=32)
GATES = 4 * HIDDEN     # 128 lanes, PyTorch gate order [i | f | g | o]


def _make_lstm_kernel(Tc: int, Bb: int):
    H = HIDDEN

    def kernel(maxlen_ref, x_ref, len_ref, wih_ref, whh_ref, b_ref,
               hout_ref, h_scr, c_scr, gx_scr):
        """Grid = (batch_blocks ["parallel"], time_chunks ["arbitrary"]).

        maxlen_ref: (1,)         SMEM  max(lengths)      (scalar prefetch)
        x_ref:      (Tc*Bb, E)   VMEM  bf16 time-chunk of embedded input
                                       (rows s*Bb:(s+1)*Bb = chunk-local step s)
        len_ref:    (Bb, 1)      VMEM  int32 true lengths (0 on padded rows)
        wih_ref:    (E, 4H)      VMEM  W_ih^T (bf16)
        whh_ref:    (4H, 4H)     VMEM  W_hh^T zero-padded into rows [3H,4H) (f32)
        b_ref:      (1, 4H)      VMEM  b_ih + b_hh (f32)
        hout_ref:   (Bb, 4H)     VMEM  final-state slab (h_T in lanes [3H,4H))
        h_scr/c_scr:(Bb, 4H)     VMEM  recurrent state, persists across chunks
        gx_scr:     (Tc*Bb, 4H)  VMEM  per-chunk input projection
        """
        tc = pl.program_id(1)
        chunk_start = tc * Tc

        @pl.when(tc == 0)
        def _init():
            h_scr[...] = jnp.zeros_like(h_scr)
            c_scr[...] = jnp.zeros_like(c_scr)

        # Skip whole chunks past the longest real sequence (per-row freezing
        # below handles raggedness inside a chunk); the final emit still runs.
        @pl.when(chunk_start < maxlen_ref[0])
        def _chunk():
            # Per-chunk input projection: one bf16 MXU GEMM, f32 accumulate.
            gx_scr[...] = (jnp.dot(x_ref[...], wih_ref[...],
                                   preferred_element_type=jnp.float32)
                           + b_ref[...])

            # NOTE: hoisting whh pins 16 vregs for the whole unrolled chunk
            # loop — fine for Bb <= ~32; for larger Bb read whh_ref inside
            # step() instead (vld sits off the serial EUP/MXU critical path).
            whh = whh_ref[...]
            lens = len_ref[...]                              # (Bb, 1) int32
            lane = lax.broadcasted_iota(jnp.int32, (Bb, GATES), 1)
            is_g = (lane >= 2 * H) & (lane < 3 * H)          # tanh lanes
            # sigmoid(x) = 0.5*tanh(x/2) + 0.5  ->  single EUP pass per step.
            pre = jnp.where(is_g, 1.0, 0.5)

            def step(s, carry):
                h_buf, c_buf = carry                         # (Bb, 4H) each
                row = pl.multiple_of(s * Bb, Bb)
                gates = gx_scr[pl.ds(row, Bb), :] + jnp.dot(
                    h_buf, whh, preferred_element_type=jnp.float32)
                t_all = jnp.tanh(gates * pre)                # one tanh pass
                act = jnp.where(is_g, t_all, 0.5 * t_all + 0.5)
                # act lanes: [sig(i) | sig(f) | tanh(g) | sig(o)].
                # sig(i)*tanh(g) lands in lane blocks 0 AND 2 (64-lane roll is
                # self-inverse), so the scheme is roll-direction insensitive.
                ig = act * pltpu.roll(act, shift=2 * H, axis=1)
                # c state lives in lanes [H, 2H): sig(f)*c_prev + sig(i)*tanh(g).
                # Other lanes hold bounded garbage (|.| <= T) never read out.
                c_new = act * c_buf + pltpu.roll(ig, shift=H, axis=1)
                # h state lives in lanes [3H, 4H): sig(o)*tanh(c_new).
                h_new = act * jnp.tanh(pltpu.roll(c_new, shift=2 * H, axis=1))
                # pack_padded_sequence: freeze state once t >= length[row].
                active = (chunk_start + s) < lens
                return (jnp.where(active, h_new, h_buf),
                        jnp.where(active, c_new, c_buf))

            h_fin, c_fin = lax.fori_loop(0, Tc, step,
                                         (h_scr[...], c_scr[...]), unroll=True)
            h_scr[...] = h_fin
            c_scr[...] = c_fin

        @pl.when(tc == pl.num_programs(1) - 1)
        def _emit():
            hout_ref[...] = h_scr[...]                       # lane-dense store

    return kernel


def lstm_text_classifier(x_ids, lengths, params, *,
                         time_chunk: int = 32, batch_blocks=None):
    H = HIDDEN
    B, T = x_ids.shape
    E = params["embedding"].shape[1]

    # v7x has 2 TensorCores: shard the (row-independent) batch across a
    # "parallel" grid axis.  No-op cost on v5e/v6e (single TC, serial axis).
    if batch_blocks is None:
        batch_blocks = 2 if B > 8 else 1
    NB = int(batch_blocks)
    Bb = -(-B // NB)                              # rows per batch block
    Bb = max(8, ((Bb + 7) // 8) * 8)              # full sublane occupancy
    Bp = NB * Bb

    # Time chunking: small static trip count per chunk (unrolled in-kernel).
    Tc = max(1, min(int(time_chunk), T))
    if (Tc * Bb) % 16:                            # keep bf16 x blocks tile-aligned
        Tc += 1
    NT = -(-T // Tc)
    Tp = NT * Tc

    # Pad ids / lengths BEFORE the gather; build the embedded input directly
    # in (batch_block, time, row, E) layout (only tiny int32 ids transposed).
    ids_pad = jnp.zeros((Bp, Tp), jnp.int32).at[:B, :T].set(x_ids.astype(jnp.int32))
    len_pad = jnp.zeros((Bp, 1), jnp.int32).at[:B, 0].set(lengths.astype(jnp.int32))
    maxlen = jnp.max(lengths).astype(jnp.int32).reshape(1)

    ids_blk = ids_pad.reshape(NB, Bb, Tp).transpose(0, 2, 1)       # (NB, Tp, Bb)
    x_tm = jnp.take(params["embedding"], ids_blk, axis=0)          # (NB, Tp, Bb, E)
    x_tm = x_tm.reshape(NB, Tp * Bb, E).astype(jnp.bfloat16)       # bf16 MXU operand

    wih_t = params["w_ih"].T.astype(jnp.bfloat16)                  # (E, 4H) bf16
    whh_pad = jnp.zeros((GATES, GATES), jnp.float32).at[3 * H:].set(
        params["w_hh"].T.astype(jnp.float32))                      # rows [3H,4H)
    bias = (params["b_ih"] + params["b_hh"]).astype(jnp.float32)[None, :]

    # VMEM budget (x double-buffered across time chunks; constants 1-buffered).
    est = (2 * Tc * Bb * E * 2          # x chunk (bf16) x2 buffers
           + Tc * Bb * GATES * 4        # gx scratch
           + 4 * Bb * GATES * 4         # h/c scratch + resident output block
           + GATES * GATES * 4 + E * GATES * 2 + GATES * 4 + Bb * 8)
    vmem_limit = int(min(max(4 * est, 16 << 20), 100 << 20))

    one_buf = pl.Buffered(1)            # constant-index blocks: no double buffer
    kernel = _make_lstm_kernel(Tc, Bb)
    h_buf = pl.pallas_call(
        kernel,
        out_shape=jax.ShapeDtypeStruct((Bp, GATES), jnp.float32),
        grid_spec=pltpu.PrefetchScalarGridSpec(
            num_scalar_prefetch=1,                      # max(lengths) -> SMEM
            grid=(NB, NT),
            in_specs=[
                pl.BlockSpec((None, Tc * Bb, E), lambda b, t, ml: (b, t, 0)),
                pl.BlockSpec((Bb, 1), lambda b, t, ml: (b, 0)),
                pl.BlockSpec((E, GATES), lambda b, t, ml: (0, 0),
                             pipeline_mode=one_buf),
                pl.BlockSpec((GATES, GATES), lambda b, t, ml: (0, 0),
                             pipeline_mode=one_buf),
                pl.BlockSpec((1, GATES), lambda b, t, ml: (0, 0),
                             pipeline_mode=one_buf),
            ],
            out_specs=pl.BlockSpec((Bb, GATES), lambda b, t, ml: (b, 0)),
            scratch_shapes=[pltpu.VMEM((Bb, GATES), jnp.float32),      # h
                            pltpu.VMEM((Bb, GATES), jnp.float32),      # c
                            pltpu.VMEM((Tc * Bb, GATES), jnp.float32)],  # gx
        ),
        compiler_params=pltpu.CompilerParams(
            dimension_semantics=("parallel", "arbitrary"),
            vmem_limit_bytes=vmem_limit),
    )(maxlen, x_tm, len_pad, wih_t, whh_pad, bias)

    # Final hidden state of real rows lives in lanes [3H, 4H).
    h_T = h_buf[:B, 3 * H:4 * H]                                   # (B, H)
    # Dropout is identity at inference; the tiny Linear(32 -> 1) stays in XLA
    # so the kernel's output store remains 128-lane dense.
    return (jnp.dot(h_T, params["w_lin"].T, precision=lax.Precision.HIGHEST)
            + params["b_lin"][None, :])


def reference_forward(x_ids, lengths, params):
    """Pure-JAX reference with identical semantics (for validation)."""
    H = HIDDEN
    x = jnp.take(params["embedding"], x_ids, axis=0)               # (B, T, E)
    B, T, E = x.shape
    hp = lax.Precision.HIGHEST

    def step(carry, x_t):
        h, c, t = carry
        gates = (jnp.dot(x_t, params["w_ih"].T, precision=hp) + params["b_ih"]
                 + jnp.dot(h, params["w_hh"].T, precision=hp) + params["b_hh"])
        i = jax.nn.sigmoid(gates[:, :H])
        f = jax.nn.sigmoid(gates[:, H:2 * H])
        g = jnp.tanh(gates[:, 2 * H:3 * H])
        o = jax.nn.sigmoid(gates[:, 3 * H:])
        c_new = f * c + i * g
        h_new = o * jnp.tanh(c_new)
        mask = (t < lengths)[:, None]
        return (jnp.where(mask, h_new, h), jnp.where(mask, c_new, c), t + 1), None

    init = (jnp.zeros((B, H), jnp.float32), jnp.zeros((B, H), jnp.float32), 0)
    (h, _, _), _ = lax.scan(step, init, jnp.transpose(x, (1, 0, 2)))
    return jnp.dot(h, params["w_lin"].T, precision=hp) + params["b_lin"]


def init_params(key, vocab, emb_dim):
    ks = jax.random.split(key, 7)
    k = 1.0 / float(jnp.sqrt(jnp.float32(HIDDEN)))
    return {
        "embedding": jax.random.normal(ks[0], (vocab, emb_dim), jnp.float32),
        "w_ih": jax.random.uniform(ks[1], (4 * HIDDEN, emb_dim), jnp.float32, -k, k),
        "w_hh": jax.random.uniform(ks[2], (4 * HIDDEN, HIDDEN), jnp.float32, -k, k),
        "b_ih": jax.random.uniform(ks[3], (4 * HIDDEN,), jnp.float32, -k, k),
        "b_hh": jax.random.uniform(ks[4], (4 * HIDDEN,), jnp.float32, -k, k),
        "w_lin": jax.random.uniform(ks[5], (1, HIDDEN), jnp.float32, -k, k),
        "b_lin": jax.random.uniform(ks[6], (1,), jnp.float32, -k, k),
    }


if __name__ == "__main__":
    B, T, V, E = 2, 8, 20, 16
    key = jax.random.PRNGKey(0)
    kp, kx = jax.random.split(key)

    params = init_params(kp, V, E)
    x_ids = jax.random.randint(kx, (B, T), 0, V, dtype=jnp.int32)   # token ids
    lengths = jnp.array([8, 5], dtype=jnp.int32)                    # true lengths

    ref = jax.block_until_ready(reference_forward(x_ids, lengths, params))

    # (batch_blocks=1, time_chunk=4): 2 time chunks -> exercises persistent
    # h/c carry; (batch_blocks=2, time_chunk=8): exercises the "parallel"
    # batch grid axis.  bf16 MXU operands in the input projection -> relaxed
    # tolerance vs. the all-f32 HIGHEST-precision reference.
    for nb, tck in ((1, 4), (2, 8)):
        out = lstm_text_classifier(x_ids, lengths, params,
                                   time_chunk=tck, batch_blocks=nb)
        out = jax.block_until_ready(out)
        assert out.shape == (B, 1), out.shape
        assert jnp.allclose(out, ref, rtol=1e-2, atol=1e-2), (nb, tck, out, ref)

    # Exercise whole-chunk skipping past max(lengths) (chunk 1 is dead).
    short_lens = jnp.array([3, 2], dtype=jnp.int32)
    ref_s = jax.block_until_ready(reference_forward(x_ids, short_lens, params))
    out_s = jax.block_until_ready(
        lstm_text_classifier(x_ids, short_lens, params,
                             time_chunk=4, batch_blocks=1))
    assert jnp.allclose(out_s, ref_s, rtol=1e-2, atol=1e-2), (out_s, ref_s)

    print("KERNEL_OK")
</pallas_src>

<mosaic_0001>
module attributes {stable_mosaic.version = 11 : i64} {
  func.func @kernel(%arg0: i32, %arg1: i32, %arg2: memref<1xi32, #tpu.memory_space<smem>>, %arg3: memref<1x32x16xbf16, #tpu.memory_space<vmem>>, %arg4: memref<8x1xi32, #tpu.memory_space<vmem>>, %arg5: memref<16x128xbf16, #tpu.memory_space<vmem>>, %arg6: memref<128x128xf32, #tpu.memory_space<vmem>>, %arg7: memref<1x128xf32, #tpu.memory_space<vmem>>, %arg8: memref<8x128xf32, #tpu.memory_space<vmem>>, %arg9: memref<8x128xf32, #tpu.memory_space<vmem>>, %arg10: memref<8x128xf32, #tpu.memory_space<vmem>>, %arg11: memref<32x128xf32, #tpu.memory_space<vmem>>) attributes {dimension_semantics = [#tpu.dimension_semantics<parallel>, #tpu.dimension_semantics<arbitrary>], iteration_bounds = array<i64: 1, 2>, scalar_prefetch = 1 : i64, scratch_operands = 3 : i64, tpu.core_type = #tpu.core_type<tc>, window_params = [{transform_indices = @transform_0, window_bounds = array<i64: 1, 32, 16>}, {transform_indices = @transform_1, window_bounds = array<i64: 8, 1>}, {pipeline_mode = #tpu.pipeline_mode<synchronous>, transform_indices = @transform_2, window_bounds = array<i64: 16, 128>}, {pipeline_mode = #tpu.pipeline_mode<synchronous>, transform_indices = @transform_3, window_bounds = array<i64: 128, 128>}, {pipeline_mode = #tpu.pipeline_mode<synchronous>, transform_indices = @transform_4, window_bounds = array<i64: 1, 128>}, {transform_indices = @transform_5, window_bounds = array<i64: 8, 128>}]} {
    %c4_i32 = arith.constant 4 : i32
    %0 = arith.muli %arg1, %c4_i32 : i32
    %c0_i32 = arith.constant 0 : i32
    %1 = arith.cmpi eq, %arg1, %c0_i32 : i32
    %2 = arith.extui %1 : i1 to i32
    %c0_i32_0 = arith.constant 0 : i32
    %3 = arith.cmpi ne, %2, %c0_i32_0 : i32
    scf.if %3 {
      %cst = arith.constant 0.000000e+00 : f32
      %11 = vector.broadcast %cst : f32 to vector<8x128xf32>
      %c0_3 = arith.constant 0 : index
      %c0_4 = arith.constant 0 : index
      %12 = vector.load %arg9[%c0_3, %c0_4] : memref<8x128xf32, #tpu.memory_space<vmem>>, vector<8x128xf32>
      tpu.vector_store %arg9[%c0_3, %c0_4], %11 {strides = array<i32>} : memref<8x128xf32, #tpu.memory_space<vmem>>, vector<8x128xf32>,
      %cst_5 = arith.constant 0.000000e+00 : f32
      %13 = vector.broadcast %cst_5 : f32 to vector<8x128xf32>
      %c0_6 = arith.constant 0 : index
      %c0_7 = arith.constant 0 : index
      %14 = vector.load %arg10[%c0_6, %c0_7] : memref<8x128xf32, #tpu.memory_space<vmem>>, vector<8x128xf32>
      tpu.vector_store %arg10[%c0_6, %c0_7], %13 {strides = array<i32>} : memref<8x128xf32, #tpu.memory_space<vmem>>, vector<8x128xf32>,
    } else {
    }
    %c0 = arith.constant 0 : index
    %4 = memref.load %arg2[%c0] : memref<1xi32, #tpu.memory_space<smem>>
    %5 = arith.cmpi slt, %0, %4 : i32
    %6 = arith.extui %5 : i1 to i32
    %c0_i32_1 = arith.constant 0 : i32
    %7 = arith.cmpi ne, %6, %c0_i32_1 : i32
    scf.if %7 {
      %c0_3 = arith.constant 0 : index
      %c0_4 = arith.constant 0 : index
      %c0_5 = arith.constant 0 : index
      %11 = vector.load %arg3[%c0_3, %c0_4, %c0_5] : memref<1x32x16xbf16, #tpu.memory_space<vmem>>, vector<1x32x16xbf16>
      %12 = vector.shape_cast %11 : vector<1x32x16xbf16> to vector<32x16xbf16>
      %c0_6 = arith.constant 0 : index
      %c0_7 = arith.constant 0 : index
      %13 = vector.load %arg5[%c0_6, %c0_7] : memref<16x128xbf16, #tpu.memory_space<vmem>>, vector<16x128xbf16>
      %cst = arith.constant dense<0.000000e+00> : vector<32x128xf32>
      %14 = tpu.matmul %12, %13, %cst {dimension_numbers = #tpu.dot_dimension_numbers<[1], [0], [0], [1], [0, 0, 1, 1], [], []>} : vector<32x16xbf16>, vector<16x128xbf16>, vector<32x128xf32> -> vector<32x128xf32>
      %c0_8 = arith.constant 0 : index
      %c0_9 = arith.constant 0 : index
      %15 = vector.load %arg7[%c0_8, %c0_9] : memref<1x128xf32, #tpu.memory_space<vmem>>, vector<1x128xf32>
      %16 = vector.broadcast %15 : vector<1x128xf32> to vector<32x128xf32>
      %17 = arith.addf %14, %16 : vector<32x128xf32>
      %c0_10 = arith.constant 0 : index
      %c0_11 = arith.constant 0 : index
      %18 = vector.load %arg11[%c0_10, %c0_11] : memref<32x128xf32, #tpu.memory_space<vmem>>, vector<32x128xf32>
      tpu.vector_store %arg11[%c0_10, %c0_11], %17 {strides = array<i32>} : memref<32x128xf32, #tpu.memory_space<vmem>>, vector<32x128xf32>,
      %c0_12 = arith.constant 0 : index
      %c0_13 = arith.constant 0 : index
      %19 = vector.load %arg6[%c0_12, %c0_13] : memref<128x128xf32, #tpu.memory_space<vmem>>, vector<128x128xf32>
      %c0_14 = arith.constant 0 : index
      %c0_15 = arith.constant 0 : index
      %20 = vector.load %arg4[%c0_14, %c0_15] : memref<8x1xi32, #tpu.memory_space<vmem>>, vector<8x1xi32>
      %21 = tpu.iota {dimensions = array<i32: 1>} : vector<8x128xi32>
      %c64_i32 = arith.constant 64 : i32
      %22 = vector.broadcast %c64_i32 : i32 to vector<8x128xi32>
      %23 = arith.cmpi sge, %21, %22 : vector<8x128xi32>
      %c96_i32 = arith.constant 96 : i32
      %24 = vector.broadcast %c96_i32 : i32 to vector<8x128xi32>
      %25 = arith.cmpi slt, %21, %24 : vector<8x128xi32>
      %26 = arith.andi %23, %25 : vector<8x128xi1>
      %cst_16 = arith.constant 1.000000e+00 : f32
      %cst_17 = arith.constant 5.000000e-01 : f32
      %27 = vector.broadcast %cst_16 : f32 to vector<8x128xf32>
      %28 = vector.broadcast %cst_17 : f32 to vector<8x128xf32>
      %29 = arith.select %26, %27, %28 : vector<8x128xi1>, vector<8x128xf32>
      %c0_18 = arith.constant 0 : index
      %c0_19 = arith.constant 0 : index
      %30 = vector.load %arg9[%c0_18, %c0_19] : memref<8x128xf32, #tpu.memory_space<vmem>>, vector<8x128xf32>
      %c0_20 = arith.constant 0 : index
      %c0_21 = arith.constant 0 : index
      %31 = vector.load %arg10[%c0_20, %c0_21] : memref<8x128xf32, #tpu.memory_space<vmem>>, vector<8x128xf32>
      %c0_i32_22 = arith.constant 0 : i32
      %c8_i32 = arith.constant 8 : i32
      %32 = arith.muli %c0_i32_22, %c8_i32 : i32
      %33 = tpu.assume_multiple %32, 8 : i32
      %34 = arith.index_cast %33 : i32 to index
      %c0_23 = arith.constant 0 : index
      %35 = vector.load %arg11[%34, %c0_23] : memref<32x128xf32, #tpu.memory_space<vmem>>, vector<8x128xf32>
      %cst_24 = arith.constant dense<0.000000e+00> : vector<8x128xf32>
      %36 = tpu.matmul %30, %19, %cst_24 {dimension_numbers = #tpu.dot_dimension_numbers<[1], [0], [0], [1], [0, 0, 1, 1], [], []>} : vector<8x128xf32>, vector<128x128xf32>, vector<8x128xf32> -> vector<8x128xf32>
      %37 = arith.addf %35, %36 : vector<8x128xf32>
      %38 = arith.mulf %37, %29 : vector<8x128xf32>
      %39 = math.tanh %38 : vector<8x128xf32>
      %cst_25 = arith.constant 5.000000e-01 : f32
      %40 = vector.broadcast %cst_25 : f32 to vector<8x128xf32>
      %41 = arith.mulf %40, %39 : vector<8x128xf32>
      %cst_26 = arith.constant 5.000000e-01 : f32
      %42 = vector.broadcast %cst_26 : f32 to vector<8x128xf32>
      %43 = arith.addf %41, %42 : vector<8x128xf32>
      %44 = arith.select %26, %39, %43 : vector<8x128xi1>, vector<8x128xf32>
      %c64_i32_27 = arith.constant 64 : i32
      %45 = tpu.dynamic_rotate %44 by %c64_i32_27 dim 1 : vector<8x128xf32>, i32 -> vector<8x128xf32>
      %46 = arith.mulf %44, %45 : vector<8x128xf32>
      %47 = arith.mulf %44, %31 : vector<8x128xf32>
      %c32_i32 = arith.constant 32 : i32
      %48 = tpu.dynamic_rotate %46 by %c32_i32 dim 1 : vector<8x128xf32>, i32 -> vector<8x128xf32>
      %49 = arith.addf %47, %48 : vector<8x128xf32>
      %c64_i32_28 = arith.constant 64 : i32
      %50 = tpu.dynamic_rotate %49 by %c64_i32_28 dim 1 : vector<8x128xf32>, i32 -> vector<8x128xf32>
      %51 = math.tanh %50 : vector<8x128xf32>
      %52 = arith.mulf %44, %51 : vector<8x128xf32>
      %53 = arith.addi %0, %c0_i32_22 : i32
      %54 = vector.broadcast %53 : i32 to vector<8x1xi32>
      %55 = arith.cmpi slt, %54, %20 : vector<8x1xi32>
      %56 = vector.shape_cast %55 : vector<8x1xi1> to vector<8x1xi1>
      %57 = vector.broadcast %56 : vector<8x1xi1> to vector<8x128xi1>
      %58 = arith.select %57, %52, %30 : vector<8x128xi1>, vector<8x128xf32>
      %59 = vector.shape_cast %55 : vector<8x1xi1> to vector<8x1xi1>
      %60 = vector.broadcast %59 : vector<8x1xi1> to vector<8x128xi1>
      %61 = arith.select %60, %49, %31 : vector<8x128xi1>, vector<8x128xf32>
      %c1_i32_29 = arith.constant 1 : i32
      %c8_i32_30 = arith.constant 8 : i32
      %62 = arith.muli %c1_i32_29, %c8_i32_30 : i32
      %63 = tpu.assume_multiple %62, 8 : i32
      %64 = arith.index_cast %63 : i32 to index
      %c0_31 = arith.constant 0 : index
      %65 = vector.load %arg11[%64, %c0_31] : memref<32x128xf32, #tpu.memory_space<vmem>>, vector<8x128xf32>
      %cst_32 = arith.constant dense<0.000000e+00> : vector<8x128xf32>
      %66 = tpu.matmul %58, %19, %cst_32 {dimension_numbers = #tpu.dot_dimension_numbers<[1], [0], [0], [1], [0, 0, 1, 1], [], []>} : vector<8x128xf32>, vector<128x128xf32>, vector<8x128xf32> -> vector<8x128xf32>
      %67 = arith.addf %65, %66 : vector<8x128xf32>
      %68 = arith.mulf %67, %29 : vector<8x128xf32>
      %69 = math.tanh %68 : vector<8x128xf32>
      %cst_33 = arith.constant 5.000000e-01 : f32
      %70 = vector.broadcast %cst_33 : f32 to vector<8x128xf32>
      %71 = arith.mulf %70, %69 : vector<8x128xf32>
      %cst_34 = arith.constant 5.000000e-01 : f32
      %72 = vector.broadcast %cst_34 : f32 to vector<8x128xf32>
      %73 = arith.addf %71, %72 : vector<8x128xf32>
      %74 = arith.select %26, %69, %73 : vector<8x128xi1>, vector<8x128xf32>
      %c64_i32_35 = arith.constant 64 : i32
      %75 = tpu.dynamic_rotate %74 by %c64_i32_35 dim 1 : vector<8x128xf32>, i32 -> vector<8x128xf32>
      %76 = arith.mulf %74, %75 : vector<8x128xf32>
      %77 = arith.mulf %74, %61 : vector<8x128xf32>
      %c32_i32_36 = arith.constant 32 : i32
      %78 = tpu.dynamic_rotate %76 by %c32_i32_36 dim 1 : vector<8x128xf32>, i32 -> vector<8x128xf32>
      %79 = arith.addf %77, %78 : vector<8x128xf32>
      %c64_i32_37 = arith.constant 64 : i32
      %80 = tpu.dynamic_rotate %79 by %c64_i32_37 dim 1 : vector<8x128xf32>, i32 -> vector<8x128xf32>
      %81 = math.tanh %80 : vector<8x128xf32>
      %82 = arith.mulf %74, %81 : vector<8x128xf32>
      %83 = arith.addi %0, %c1_i32_29 : i32
      %84 = vector.broadcast %83 : i32 to vector<8x1xi32>
      %85 = arith.cmpi slt, %84, %20 : vector<8x1xi32>
      %86 = vector.shape_cast %85 : vector<8x1xi1> to vector<8x1xi1>
      %87 = vector.broadcast %86 : vector<8x1xi1> to vector<8x128xi1>
      %88 = arith.select %87, %82, %58 : vector<8x128xi1>, vector<8x128xf32>
      %89 = vector.shape_cast %85 : vector<8x1xi1> to vector<8x1xi1>
      %90 = vector.broadcast %89 : vector<8x1xi1> to vector<8x128xi1>
      %91 = arith.select %90, %79, %61 : vector<8x128xi1>, vector<8x128xf32>
      %c2_i32 = arith.constant 2 : i32
      %c8_i32_38 = arith.constant 8 : i32
      %92 = arith.muli %c2_i32, %c8_i32_38 : i32
      %93 = tpu.assume_multiple %92, 8 : i32
      %94 = arith.index_cast %93 : i32 to index
      %c0_39 = arith.constant 0 : index
      %95 = vector.load %arg11[%94, %c0_39] : memref<32x128xf32, #tpu.memory_space<vmem>>, vector<8x128xf32>
      %cst_40 = arith.constant dense<0.000000e+00> : vector<8x128xf32>
      %96 = tpu.matmul %88, %19, %cst_40 {dimension_numbers = #tpu.dot_dimension_numbers<[1], [0], [0], [1], [0, 0, 1, 1], [], []>} : vector<8x128xf32>, vector<128x128xf32>, vector<8x128xf32> -> vector<8x128xf32>
      %97 = arith.addf %95, %96 : vector<8x128xf32>
      %98 = arith.mulf %97, %29 : vector<8x128xf32>
      %99 = math.tanh %98 : vector<8x128xf32>
      %cst_41 = arith.constant 5.000000e-01 : f32
      %100 = vector.broadcast %cst_41 : f32 to vector<8x128xf32>
      %101 = arith.mulf %100, %99 : vector<8x128xf32>
      %cst_42 = arith.constant 5.000000e-01 : f32
      %102 = vector.broadcast %cst_42 : f32 to vector<8x128xf32>
      %103 = arith.addf %101, %102 : vector<8x128xf32>
      %104 = arith.select %26, %99, %103 : vector<8x128xi1>, vector<8x128xf32>
      %c64_i32_43 = arith.constant 64 : i32
      %105 = tpu.dynamic_rotate %104 by %c64_i32_43 dim 1 : vector<8x128xf32>, i32 -> vector<8x128xf32>
      %106 = arith.mulf %104, %105 : vector<8x128xf32>
      %107 = arith.mulf %104, %91 : vector<8x128xf32>
      %c32_i32_44 = arith.constant 32 : i32
      %108 = tpu.dynamic_rotate %106 by %c32_i32_44 dim 1 : vector<8x128xf32>, i32 -> vector<8x128xf32>
      %109 = arith.addf %107, %108 : vector<8x128xf32>
      %c64_i32_45 = arith.constant 64 : i32
      %110 = tpu.dynamic_rotate %109 by %c64_i32_45 dim 1 : vector<8x128xf32>, i32 -> vector<8x128xf32>
      %111 = math.tanh %110 : vector<8x128xf32>
      %112 = arith.mulf %104, %111 : vector<8x128xf32>
      %113 = arith.addi %0, %c2_i32 : i32
      %114 = vector.broadcast %113 : i32 to vector<8x1xi32>
      %115 = arith.cmpi slt, %114, %20 : vector<8x1xi32>
      %116 = vector.shape_cast %115 : vector<8x1xi1> to vector<8x1xi1>
      %117 = vector.broadcast %116 : vector<8x1xi1> to vector<8x128xi1>
      %118 = arith.select %117, %112, %88 : vector<8x128xi1>, vector<8x128xf32>
      %119 = vector.shape_cast %115 : vector<8x1xi1> to vector<8x1xi1>
      %120 = vector.broadcast %119 : vector<8x1xi1> to vector<8x128xi1>
      %121 = arith.select %120, %109, %91 : vector<8x128xi1>, vector<8x128xf32>
      %c3_i32 = arith.constant 3 : i32
      %c8_i32_46 = arith.constant 8 : i32
      %122 = arith.muli %c3_i32, %c8_i32_46 : i32
      %123 = tpu.assume_multiple %122, 8 : i32
      %124 = arith.index_cast %123 : i32 to index
      %c0_47 = arith.constant 0 : index
      %125 = vector.load %arg11[%124, %c0_47] : memref<32x128xf32, #tpu.memory_space<vmem>>, vector<8x128xf32>
      %cst_48 = arith.constant dense<0.000000e+00> : vector<8x128xf32>
      %126 = tpu.matmul %118, %19, %cst_48 {dimension_numbers = #tpu.dot_dimension_numbers<[1], [0], [0], [1], [0, 0, 1, 1], [], []>} : vector<8x128xf32>, vector<128x128xf32>, vector<8x128xf32> -> vector<8x128xf32>
      %127 = arith.addf %125, %126 : vector<8x128xf32>
      %128 = arith.mulf %127, %29 : vector<8x128xf32>
      %129 = math.tanh %128 : vector<8x128xf32>
      %cst_49 = arith.constant 5.000000e-01 : f32
      %130 = vector.broadcast %cst_49 : f32 to vector<8x128xf32>
      %131 = arith.mulf %130, %129 : vector<8x128xf32>
      %cst_50 = arith.constant 5.000000e-01 : f32
      %132 = vector.broadcast %cst_50 : f32 to vector<8x128xf32>
      %133 = arith.addf %131, %132 : vector<8x128xf32>
      %134 = arith.select %26, %129, %133 : vector<8x128xi1>, vector<8x128xf32>
      %c64_i32_51 = arith.constant 64 : i32
      %135 = tpu.dynamic_rotate %134 by %c64_i32_51 dim 1 : vector<8x128xf32>, i32 -> vector<8x128xf32>
      %136 = arith.mulf %134, %135 : vector<8x128xf32>
      %137 = arith.mulf %134, %121 : vector<8x128xf32>
      %c32_i32_52 = arith.constant 32 : i32
      %138 = tpu.dynamic_rotate %136 by %c32_i32_52 dim 1 : vector<8x128xf32>, i32 -> vector<8x128xf32>
      %139 = arith.addf %137, %138 : vector<8x128xf32>
      %c64_i32_53 = arith.constant 64 : i32
      %140 = tpu.dynamic_rotate %139 by %c64_i32_53 dim 1 : vector<8x128xf32>, i32 -> vector<8x128xf32>
      %141 = math.tanh %140 : vector<8x128xf32>
      %142 = arith.mulf %134, %141 : vector<8x128xf32>
      %143 = arith.addi %0, %c3_i32 : i32
      %144 = vector.broadcast %143 : i32 to vector<8x1xi32>
      %145 = arith.cmpi slt, %144, %20 : vector<8x1xi32>
      %146 = vector.shape_cast %145 : vector<8x1xi1> to vector<8x1xi1>
      %147 = vector.broadcast %146 : vector<8x1xi1> to vector<8x128xi1>
      %148 = arith.select %147, %142, %118 : vector<8x128xi1>, vector<8x128xf32>
      %149 = vector.shape_cast %145 : vector<8x1xi1> to vector<8x1xi1>
      %150 = vector.broadcast %149 : vector<8x1xi1> to vector<8x128xi1>
      %151 = arith.select %150, %139, %121 : vector<8x128xi1>, vector<8x128xf32>
      %c4_i32_54 = arith.constant 4 : i32
      %c0_55 = arith.constant 0 : index
      %c0_56 = arith.constant 0 : index
      %152 = vector.load %arg9[%c0_55, %c0_56] : memref<8x128xf32, #tpu.memory_space<vmem>>, vector<8x128xf32>
      tpu.vector_store %arg9[%c0_55, %c0_56], %148 {strides = array<i32>} : memref<8x128xf32, #tpu.memory_space<vmem>>, vector<8x128xf32>,
      %c0_57 = arith.constant 0 : index
      %c0_58 = arith.constant 0 : index
      %153 = vector.load %arg10[%c0_57, %c0_58] : memref<8x128xf32, #tpu.memory_space<vmem>>, vector<8x128xf32>
      tpu.vector_store %arg10[%c0_57, %c0_58], %151 {strides = array<i32>} : memref<8x128xf32, #tpu.memory_space<vmem>>, vector<8x128xf32>,
    } else {
    }
    %c1_i32 = arith.constant 1 : i32
    %8 = arith.cmpi eq, %arg1, %c1_i32 : i32
    %9 = arith.extui %8 : i1 to i32
    %c0_i32_2 = arith.constant 0 : i32
    %10 = arith.cmpi ne, %9, %c0_i32_2 : i32
    scf.if %10 {
      %c0_3 = arith.constant 0 : index
      %c0_4 = arith.constant 0 : index
      %11 = vector.load %arg9[%c0_3, %c0_4] : memref<8x128xf32, #tpu.memory_space<vmem>>, vector<8x128xf32>
      %c0_5 = arith.constant 0 : index
      %c0_6 = arith.constant 0 : index
      %12 = vector.load %arg8[%c0_5, %c0_6] : memref<8x128xf32, #tpu.memory_space<vmem>>, vector<8x128xf32>
      tpu.vector_store %arg8[%c0_5, %c0_6], %11 {strides = array<i32>} : memref<8x128xf32, #tpu.memory_space<vmem>>, vector<8x128xf32>,
    } else {
    }
    return
  }
  func.func @transform_0(%arg0: i32, %arg1: i32, %arg2: memref<1xi32, #tpu.memory_space<smem>>) -> (i32, i32, i32) {
    %c0_i32 = arith.constant 0 : i32
    %c0_i32_0 = arith.constant 0 : i32
    return %arg0, %arg1, %c0_i32 : i32, i32, i32
  }
  func.func @transform_1(%arg0: i32, %arg1: i32, %arg2: memref<1xi32, #tpu.memory_space<smem>>) -> (i32, i32) {
    %c0_i32 = arith.constant 0 : i32
    %c0_i32_0 = arith.constant 0 : i32
    return %arg0, %c0_i32 : i32, i32
  }
  func.func @transform_2(%arg0: i32, %arg1: i32, %arg2: memref<1xi32, #tpu.memory_space<smem>>) -> (i32, i32) {
    %c0_i32 = arith.constant 0 : i32
    %c0_i32_0 = arith.constant 0 : i32
    %c0_i32_1 = arith.constant 0 : i32
    return %c0_i32, %c0_i32_0 : i32, i32
  }
  func.func @transform_3(%arg0: i32, %arg1: i32, %arg2: memref<1xi32, #tpu.memory_space<smem>>) -> (i32, i32) {
    %c0_i32 = arith.constant 0 : i32
    %c0_i32_0 = arith.constant 0 : i32
    %c0_i32_1 = arith.constant 0 : i32
    return %c0_i32, %c0_i32_0 : i32, i32
  }
  func.func @transform_4(%arg0: i32, %arg1: i32, %arg2: memref<1xi32, #tpu.memory_space<smem>>) -> (i32, i32) {
    %c0_i32 = arith.constant 0 : i32
    %c0_i32_0 = arith.constant 0 : i32
    %c0_i32_1 = arith.constant 0 : i32
    return %c0_i32, %c0_i32_0 : i32, i32
  }
  func.func @transform_5(%arg0: i32, %arg1: i32, %arg2: memref<1xi32, #tpu.memory_space<smem>>) -> (i32, i32) {
    %c0_i32 = arith.constant 0 : i32
    %c0_i32_0 = arith.constant 0 : i32
    return %arg0, %c0_i32 : i32, i32
  }
}

</mosaic_0001>

<bundles_post_ra>
// kernel: tpu_custom_call.1
= control target key start
LH: loop header
LB: loop body
LE: loop exit
PB: predicated region body
PF: predicated region fallthrough
CT: control target
= control target key end

     0   :  { %s1718_s0 = inlined_call_operand.<no memory space> [shape: s32[1], index: 0, kind: input, shape index: {}]   ;;  %s1719_s1 = inlined_call_operand.vmem [shape: bf16[1,64,16], index: 1, kind: input, shape index: {}]   ;;  %s1720_s2 = inlined_call_operand.vmem [shape: s32[8,1], index: 2, kind: input, shape index: {}]   ;;  %s1721_s3 = inlined_call_operand.vmem [shape: bf16[16,128], index: 3, kind: input, shape index: {}]   ;;  %s1722_s4 = inlined_call_operand.hbm [shape: f32[128,128], index: 4, kind: input, shape index: {}]   ;;  %s1723_s5 = inlined_call_operand.vmem [shape: f32[1,128], index: 5, kind: input, shape index: {}]   ;;  %s1724_s6 = inlined_call_operand.hbm [shape: f32[8,128], index: 6, kind: output, shape index: {}]  }
   0x1   :  { %11 = sst [smem:[#allocation6]] %s1718_s0 }
   0x2   :  { %12 = vsyncpa [#allocation8], 0 }
   0x3   :  { %13 = vsyncpa [#allocation9], 0  ;;  %s1444_s23 = smov 0   ;;  %s1446_s24 = smov 0  }
   0x4   :  { %s1448_s25 = smov 0  }
   0x5 LB: > { %s899_s0 = sadd.s32 4294967295, %s1392_s25   ;;  %s28_s26 = sadd.s32 1, %s1388_s24  ;;  %s1392_s25 = sphi %s1448_s25, %s19_s25   ;;  %s1388_s24 = sphi %s1446_s24, %s1737_s24   ;;  %s1384_s23 = sphi %s1444_s23, %s1736_s23  }
   0x6   : > { %p29_p0 = scmp.ge.s32.totalorder %s28_s26, 2  ;;  %p900_p1 = scmp.ge.s32.totalorder %s1392_s25, 1 }
   0x7   : > { %p179_p2 = scmp.lt.s32.totalorder %s1392_s25, 3  ;;  %p1471_p4 = scmp.eq.s32.totalorder %s899_s0, 0 }
   0x8   : > { %s1739_s26 = smov (%p29_p0, %s28_s26), 0  ;;  %s1394_s29 = smov [#allocation7]  }
   0x9   : > { %p1465_p3 = pnand %p900_p1, %p179_p2  ;;  %s201_s30 = sshll.u32 %s1394_s29, 4  ;;  %s202_s30 = int_to_ptr.vmem [resolvable:$true] %s201_s30 }
   0xa   : > { %s1729_s28 = scalar_select %p1471_p4, 1, 0 }
   0xb   : > { %s1728_s27 = scalar_select %p1465_p3, 1, 0 }
   0xc   : > { %p1243_p5 = pneg %p1465_p3  ;;  %s1308_s10 = scalar_lea.hbm %s1722_s4, 2048 }
   0xd   : > { %p1309_p7 = scmp.ne.s32.totalorder %s1722_s4, %s1308_s10  ;;  %p1315_p11 = scmp.lt.u32.totalorder %s1308_s10, %s1722_s4 }
   0xe   : > { %p1479_p6 = pnand %p1471_p4, %p1243_p5 }
  0x10   : > { %p1310_p8 = pneg %p1479_p6 }
  0x12   : > { %p1311_p9 = pnand %p1310_p8, %p1309_p7 }
  0x14   : > { %p1312_p10 = pneg %p1311_p9 }
  0x16   : > { %p1317_p12 = pnand %p1315_p11, %p1312_p10 }
  0x18   : > { %1320 = shalt.err (!%p1317_p12)
}
  0x19   : > { %s1321_s15 = scalar_lea.vmem %s202_s30, 2048  ;;  %p1329_p2 = scmp.lt.s32.totalorder %s202_s30, %s202_s30 }
  0x1a   : > { %p1322_p13 = scmp.ne.s32.totalorder %s202_s30, %s1321_s15  ;;  %p1330_p5 = scmp.lt.s32.totalorder %s1321_s15, %s1321_s15 }
  0x1c   : > { %p1324_p0 = pnand %p1322_p13, %p1310_p8  ;;  %p1331_p4 = por %p1330_p5, %p1329_p2 }
  0x1e   : > { %p1325_p1 = pneg %p1324_p0 }
  0x20   : > { %p1332_p3 = pnand %p1331_p4, %p1325_p1 }
  0x22   : > { %1335 = shalt.err (!%p1332_p3)
}
  0x23   : > { %s1395_s16 = smov 128   ;;  %s1396_s17 = smov 8  }
  0x24   : > { %1246 = dma.hbm_to_vmem [thread:$0]  (!%p1479_p6), %s1722_s4, 2048, %s202_s30, [#allocation8], %s1395_s16, %s1395_s16, %s1396_s17  }
  0x25   : > { %p1731_p7 = scmp.ne.s32.totalorder %s1728_s27, 0 }
  0x26   : > { %p1732_p9 = scmp.ne.s32.totalorder (!%p1731_p7), %s1729_s28, 0 }
  0x27   : > { %233 = sbr.rel (%p1731_p7) target bundleno = 2517 (0x9d5), region = 40 }
  0x2e   : > { %1375 = dma.done.wait (%p1732_p9), [#allocation8], 2048  }
  0x2f   : > { %1377 = vsyncadd (%p1732_p9), [#allocation8], 4294965248  ;;  %s1506_s20 = sshll.u32 %s1384_s23, 2  ;;  %p909_p4 = scmp.ne.s32.totalorder %s1384_s23, 0 }
  0x30   : > { %p267_p3 = scmp.lt.s32.totalorder %s1506_s20, 7  ;;  %v1397_v0 = vmov (!%p909_p4), 0.0  }
  0x31   : > { %283 = sbr.rel (%p909_p4) target bundleno = 56 (0x38), region = 48  ;;  %284 = vst [vmem:[#allocation2] sm:$0xff] (!%p909_p4), %v1397_v0  ;;  %285 = vst [vmem:[#allocation3] sm:$0xff] (!%p909_p4), %v1397_v0 }
  0x32   : > { %s268_s21 = scalar_select %p267_p3, %s1506_s20, 7 }
  0x34   : > { %s907_s22 = sshll.u32 %s268_s21, 2 }
  0x35   : > { %s1513_s30 = scalar_lea.vmem %s1719_s1, %s907_s22 }
  0x38 PF: > { %s286_s27 = sld [smem:[#allocation6]] }
  0x3e   : > { %p910_p6 = scmp.ge.s32.totalorder %s1506_s20, %s286_s27 }
  0x3f   : > { %v380_v1 = vld [vmem:[#allocation7] sm:$0xff] (!%p910_p6)  ;;  %v381_v2 = vld [vmem:[#allocation7 + $0x8] sm:$0xff] (!%p910_p6)  ;;  %v382_v3 = vld [vmem:[#allocation7 + $0x10] sm:$0xff] (!%p910_p6)  ;;  %v1398_v4 = vmov (!%p910_p6), 0.0|0.0   ;;  %vm1399_vm0 = vmmov (!%p910_p6), 0   ;;  %v1400_v7 = vmov (!%p910_p6), 0.0   ;;  %v397_v39 = vlaneseq (!%p910_p6) }
  0x40   : > { %290 = sbr.rel (%p910_p6) target bundleno = 2483 (0x9b3), region = 52  ;;  %1139 = vmatprep.subr.bf16.mxu1 (!%p910_p6), %v1398_v4  ;;  %v1518_v5 = vpack.c.bf16 (!%p910_p6), %v381_v2, %v380_v1  ;;  %v383_v6 = vld [vmem:[#allocation7 + $0x18] sm:$0xff] (!%p910_p6)  ;;  %1031 = vmatprep.mubr.msk.f32.mxu1 (!%p910_p6), %vm1399_vm0, %v1400_v7  ;;  %v384_v9 = vld [vmem:[#allocation7 + $0x20] sm:$0xff] (!%p910_p6)  ;;  %v385_v10 = vld [vmem:[#allocation7 + $0x28] sm:$0xff] (!%p910_p6)  ;;  %vm320_vm1 = vcmask (!%p910_p6), 130048   ;;  %v1401_v43 = vmov (!%p910_p6), 0.5   ;;  %v493_v58 = vstv (!%p910_p6), %s1506_s20 }
  0x41   : > { %v1523_v8 = vpack.c.bf16 (!%p910_p6), %v383_v6, %v382_v3  ;;  %v1289_v11 = vld [vmem:[%s1721_s3] sm:$0xff] (!%p910_p6)   ;;  %v1531_v13 = vpack.c.bf16 (!%p910_p6), %v385_v10, %v384_v9  ;;  %v1291_v14 = vld [vmem:[%s1513_s30 + $0x8] sm:$0xff] (!%p910_p6)   ;;  %v388_v18 = vld [vmem:[#allocation7 + $0x40] sm:$0xff] (!%p910_p6)  ;;  %v398_v40 = vand.u32 (!%p910_p6), 127, %v397_v39  ;;  %s1402_s11 = smov (!%p910_p6), 64   ;;  %v1403_v53 = vmov (!%p910_p6), 0  }
  0x42   : > { %1141 = vmatpush3.bf16.msra.mxu1 (!%p910_p6), %v1518_v5  ;;  %v1290_v12 = vld [vmem:[%s1513_s30] sm:$0xff] (!%p910_p6)   ;;  %993 = vmatprep.subr.bf16.mxu0 (!%p910_p6), %v1289_v11  ;;  %v387_v16 = vld [vmem:[#allocation7 + $0x38] sm:$0xff] (!%p910_p6)  ;;  %v389_v19 = vld [vmem:[#allocation7 + $0x48] sm:$0xff] (!%p910_p6)  ;;  %s1404_s12 = smov (!%p910_p6), 32   ;;  %s591_s15 = sadd.s32 (!%p910_p6), 1, %s1506_s20 }
  0x43   : > { %1142 = vmatprep.subr.bf16.mxu1 (!%p910_p6), %v1398_v4  ;;  %994 = vmatpush3.bf16.msra.mxu0 (!%p910_p6), %v1289_v11  ;;  %v386_v15 = vld [vmem:[#allocation7 + $0x30] sm:$0xff] (!%p910_p6)  ;;  %v1545_v20 = vpack.c.bf16 (!%p910_p6), %v389_v19, %v388_v18  ;;  %v391_v22 = vld [vmem:[#allocation7 + $0x58] sm:$0xff] (!%p910_p6)  ;;  %v392_v24 = vld [vmem:[#allocation7 + $0x60] sm:$0xff] (!%p910_p6)  ;;  %vm399_vm2 = vcmp.ge.s32.totalorder (!%p910_p6), %v398_v40, 64  ;;  %vm400_vm3 = vcmp.lt.s32.totalorder (!%p910_p6), %v398_v40, 96  ;;  %s690_s16 = sadd.s32 (!%p910_p6), 2, %s1506_s20 }
  0x44   : > { %995 = vmatprep.mubr.msk.bf16.mxu0 (!%p910_p6), %vm320_vm1, %v1290_v12  ;;  %1163 = vmatprep.subr.bf16.mxu0 (!%p910_p6), %v1398_v4  ;;  %v1537_v17 = vpack.c.bf16 (!%p910_p6), %v387_v16, %v386_v15  ;;  %v390_v21 = vld [vmem:[#allocation7 + $0x50] sm:$0xff] (!%p910_p6)  ;;  %v393_v25 = vld [vmem:[#allocation7 + $0x68] sm:$0xff] (!%p910_p6)  ;;  %v395_v28 = vld [vmem:[#allocation7 + $0x78] sm:$0xff] (!%p910_p6)  ;;  %s789_s17 = sadd.s32 (!%p910_p6), 3, %s1506_s20 }
  0x45   : > { %v1551_v23 = vpack.c.bf16 (!%p910_p6), %v391_v22, %v390_v21  ;;  %v1557_v26 = vpack.c.bf16 (!%p910_p6), %v393_v25, %v392_v24  ;;  %v394_v27 = vld [vmem:[#allocation7 + $0x70] sm:$0xff] (!%p910_p6)  ;;  %vm1603_vm4 = vmand (!%p910_p6), %vm399_vm2, %vm400_vm3  ;;  %1287 = vset.pattern.permute.xlu1 (!%p910_p6), %v1403_v53  ;;  %1288 = vset.pattern.permute.xlu0 (!%p910_p6), %v1403_v53  ;;  %v404_v56 = vld [vmem:[#allocation3] sm:$0xff] (!%p910_p6) }
  0x46   : > { %1144 = vmatpush3.bf16.msra.mxu1 (!%p910_p6), %v1523_v8  ;;  %996 = vmatmul.mubr.msk.bf16.vlgmr.msra.gmra.mrb[0].mxu0 (!%p910_p6), %vm320_vm1, %v1291_v14  ;;  %v1563_v29 = vpack.c.bf16 (!%p910_p6), %v395_v28, %v394_v27  ;;  %v1569_v30 = vld [vmem:[#allocation2] sm:$0xff] (!%p910_p6)  ;;  %v1609_v44 = vsel (!%p910_p6), %vm1603_vm4, 1.0, %v1401_v43 }
  0x47   : > { %1145 = vmatprep.subr.bf16.mxu1 %v1398_v4  ;;  %1165 = vmatpush3.bf16.msra.mxu0 %v1518_v5  ;;  %v911_v31 = vld [vmem:[%s1723_s5] ss:$0 sm:$0xff] }
  0x48   : > { %1166 = vmatprep.subr.bf16.mxu0 %v1398_v4  ;;  %1066 = vmatprep.mubr.msk.f32.mxu0 %vm1399_vm0, %v1400_v7  ;;  %v1621_v57 = vld [vmem:[%s1720_s2] sm:$0xff] }
  0x49   : > { %vm494_vm5 = vcmp.lt.s32.totalorder %v493_v58, %v1621_v57 }
  0x4a   : > { %1147 = vmatpush3.bf16.msra.mxu1 %v1531_v13  ;;  %v495_v62 = vsel %vm494_vm5, 1, %v1403_v53 }
  0x4b   : > { %1148 = vmatprep.subr.bf16.mxu1 %v1398_v4  ;;  %1168 = vmatpush3.bf16.msra.mxu0 %v1523_v8 }
  0x4c   : > { %1169 = vmatprep.subr.bf16.mxu0 %v1398_v4 }
  0x4e   : > { %1150 = vmatpush3.bf16.msra.mxu1 %v1537_v17 }
  0x4f   : > { %1151 = vmatprep.subr.bf16.mxu1 %v1398_v4  ;;  %1171 = vmatpush3.bf16.msra.mxu0 %v1531_v13 }
  0x50   : > { %1172 = vmatprep.subr.bf16.mxu0 %v1398_v4 }
  0x52   : > { %1153 = vmatpush3.bf16.msra.mxu1 %v1545_v20 }
  0x53   : > { %1154 = vmatprep.subr.bf16.mxu1 %v1398_v4  ;;  %1174 = vmatpush3.bf16.msra.mxu0 %v1537_v17 }
  0x54   : > { %1175 = vmatprep.subr.bf16.mxu0 %v1398_v4 }
  0x56   : > { %1156 = vmatpush3.bf16.msra.mxu1 %v1551_v23 }
  0x57   : > { %1157 = vmatprep.subr.bf16.mxu1 %v1398_v4  ;;  %1177 = vmatpush3.bf16.msra.mxu0 %v1545_v20 }
  0x58   : > { %1178 = vmatprep.subr.bf16.mxu0 %v1398_v4 }
  0x5a   : > { %1159 = vmatpush3.bf16.msra.mxu1 %v1557_v26 }
  0x5b   : > { %1160 = vmatprep.subr.bf16.mxu1 %v1398_v4  ;;  %1180 = vmatpush3.bf16.msra.mxu0 %v1551_v23 }
  0x5c   : > { %1181 = vmatprep.subr.bf16.mxu0 %v1398_v4 }
  0x5e   : > { %1162 = vmatpush3.bf16.msra.mxu1 %v1563_v29 }
  0x5f   : > { %1187 = vmatprep.subr.bf16.mxu1 %v1398_v4  ;;  %1183 = vmatpush3.bf16.msra.mxu0 %v1557_v26 }
  0x60   : > { %1184 = vmatprep.subr.bf16.mxu0 %v1398_v4 }
  0x61   : > { %1032 = vmatmul.mubr.f32.vlgmr.msra.gmra.mrb[0].mxu1 %v1569_v30 }
  0x62   : > { %1189 = vmatpush3.bf16.msra.mxu1 %v1518_v5  ;;  %1101 = vmatprep.mubr.msk.f32.mxu1 %vm1399_vm0, %v1400_v7 }
  0x63   : > { %1190 = vmatprep.subr.bf16.mxu1 %v1398_v4  ;;  %1186 = vmatpush3.bf16.msra.mxu0 %v1563_v29 }
  0x64   : > { %1211 = vmatprep.subr.bf16.mxu0 %v1398_v4 }
  0x66   : > { %1192 = vmatpush3.bf16.msra.mxu1 %v1523_v8 }
  0x67   : > { %1193 = vmatprep.subr.bf16.mxu1 %v1398_v4 }
  0x6a   : > { %1195 = vmatpush3.bf16.msra.mxu1 %v1531_v13 }
  0x6b   : > { %1196 = vmatprep.subr.bf16.mxu1 %v1398_v4 }
  0x6e   : > { %1198 = vmatpush3.bf16.msra.mxu1 %v1537_v17 }
  0x6f   : > { %1199 = vmatprep.subr.bf16.mxu1 %v1398_v4 }
  0x72   : > { %1201 = vmatpush3.bf16.msra.mxu1 %v1545_v20 }
  0x73   : > { %1202 = vmatprep.subr.bf16.mxu1 %v1398_v4 }
  0x76   : > { %1204 = vmatpush3.bf16.msra.mxu1 %v1551_v23 }
  0x77   : > { %1205 = vmatprep.subr.bf16.mxu1 %v1398_v4 }
  0x7a   : > { %1207 = vmatpush3.bf16.msra.mxu1 %v1557_v26 }
  0x7b   : > { %1208 = vmatprep.subr.bf16.mxu1 %v1398_v4 }
  0x7e   : > { %1210 = vmatpush3.bf16.msra.mxu1 %v1563_v29 }
 0x119   : > { %v997_v32 = vpop.f32.mrb[0].mxu0 }
 0x11a   : > { %v1599_v33 = vadd.f32 %v997_v32, %v911_v31  ;;  %v361_v34 = vpop.f32.mrb[1].mxu0 }
 0x11b   : > { %v998_v35 = vpop.f32.mrb[2].mxu0  ;;  %v362_v41 = vadd.f32 %v911_v31, %v361_v34  ;;  %v691_v34 = vstv %s690_s16 }
 0x11c   : > { %v1601_v36 = vadd.f32 %v998_v35, %v911_v31  ;;  %v364_v37 = vpop.f32.mrb[3].mxu0  ;;  %vm692_vm9 = vcmp.lt.s32.totalorder %v691_v34, %v1621_v57 }
 0x11d   : > { %v365_v38 = vadd.f32 %v911_v31, %v364_v37 }
 0x134   : > { %v472_v45 = vpop.f32.mrb[0].mxu1 }
 0x135   : > { %v476_v46 = vadd.f32 %v472_v45, %v362_v41  ;;  %v1033_v47 = vpop.f32.mrb[1].mxu1 }
 0x137   : > { %v477_v48 = vmul.f32 %v476_v46, %v1609_v44 }
 0x139   : > { %1292 = vtanh.f32 %v477_v48 }
 0x143   : > { %v1293_v49 = vpop.eup %1292 }
 0x144   : > { %v479_v50 = vmul.f32 0.5, %v1293_v49 }
 0x146   : > { %v480_v51 = vadd.f32 0.5, %v479_v50 }
 0x148   : > { %v481_v52 = vsel %vm1603_vm4, %v1293_v49, %v480_v51 }
 0x149   : > { %482 = vrot.lane.b32.xlu0 %v481_v52, %s1402_s11  ;;  %v485_v59 = vmul.f32 %v481_v52, %v404_v56 }
 0x1bb   : > { %v483_v54 = vpop.permute.xlu0 %482 }
 0x1bc   : > { %v484_v55 = vmul.f32 %v483_v54, %v481_v52 }
 0x1be   : > { %486 = vrot.lane.b32.xlu0 %v484_v55, %s1404_s12 }
 0x230   : > { %v487_v60 = vpop.permute.xlu0 %486 }
 0x231   : > { %v488_v61 = vadd.f32 %v487_v60, %v485_v59  ;;  %v790_v59 = vstv %s789_s17 }
 0x232   : > { %vm791_vm11 = vcmp.lt.s32.totalorder %v790_v59, %v1621_v57 }
 0x233   : > { %489 = vrot.lane.b32.xlu1 %v488_v61, %s1402_s11 }
 0x237   : > { %497 = vperm.xlu1 %1287, %v495_v62  }
 0x2a5   : > { %v490_v63 = vpop.permute.xlu1 %489 }
 0x2a6   : > { %1294 = vtanh.f32 %v490_v63 }
 0x2b0   : > { %v1295_v0 = vpop.eup %1294 }
 0x2b1   : > { %v492_v1 = vmul.f32 %v1295_v0, %v481_v52 }
 0x2b6   : > { %v498_v2 = vpop.permute.xlu1 %497 }
 0x2b7   : > { %vm499_vm6 = vcmp.eq.s32.totalorder %v498_v2, 1 }
 0x2b8   : > { %v500_v3 = vsel %vm499_vm6, %v492_v1, %v1569_v30  ;;  %v501_v16 = vsel %vm499_vm6, %v488_v61, %v404_v56 }
 0x2b9   : > { %1067 = vmatmul.mubr.f32.vlgmr.msra.gmra.mrb[4].mxu0 %v500_v3 }
 0x2ba   : > { %1213 = vmatpush3.bf16.msra.mxu0 %v1518_v5  ;;  %1136 = vmatprep.mubr.msk.f32.mxu0 %vm1399_vm0, %v1400_v7 }
 0x2bb   : > { %1214 = vmatprep.subr.bf16.mxu0 %v1398_v4 }
 0x2be   : > { %1216 = vmatpush3.bf16.msra.mxu0 %v1523_v8 }
 0x2bf   : > { %1217 = vmatprep.subr.bf16.mxu0 %v1398_v4 }
 0x2c2   : > { %1219 = vmatpush3.bf16.msra.mxu0 %v1531_v13  ;;  %v592_v13 = vstv %s591_s15 }
 0x2c3   : > { %1220 = vmatprep.subr.bf16.mxu0 %v1398_v4  ;;  %vm593_vm7 = vcmp.lt.s32.totalorder %v592_v13, %v1621_v57 }
 0x2c4   : > { %v594_v15 = vsel %vm593_vm7, 1, %v1403_v53 }
 0x2c6   : > { %1222 = vmatpush3.bf16.msra.mxu0 %v1537_v17 }
 0x2c7   : > { %1223 = vmatprep.subr.bf16.mxu0 %v1398_v4 }
 0x2ca   : > { %1225 = vmatpush3.bf16.msra.mxu0 %v1545_v20 }
 0x2cb   : > { %1226 = vmatprep.subr.bf16.mxu0 %v1398_v4 }
 0x2ce   : > { %1228 = vmatpush3.bf16.msra.mxu0 %v1551_v23 }
 0x2cf   : > { %1229 = vmatprep.subr.bf16.mxu0 %v1398_v4 }
 0x2d2   : > { %1231 = vmatpush3.bf16.msra.mxu0 %v1557_v26 }
 0x2d3   : > { %1232 = vmatprep.subr.bf16.mxu0 %v1398_v4 }
 0x2d6   : > { %1234 = vmatpush3.bf16.msra.mxu0 %v1563_v29 }
 0x38c   : > { %v570_v5 = vpop.f32.mrb[4].mxu0 }
 0x38d   : > { %v574_v6 = vadd.f32 %v570_v5, %v365_v38  ;;  %v1068_v7 = vpop.f32.mrb[5].mxu0 }
 0x38f   : > { %v575_v8 = vmul.f32 %v574_v6, %v1609_v44 }
 0x391   : > { %1296 = vtanh.f32 %v575_v8 }
 0x39b   : > { %v1297_v9 = vpop.eup %1296 }
 0x39c   : > { %v577_v10 = vmul.f32 0.5, %v1297_v9 }
 0x39e   : > { %v578_v11 = vadd.f32 0.5, %v577_v10 }
 0x3a0   : > { %v579_v12 = vsel %vm1603_vm4, %v1297_v9, %v578_v11 }
 0x3a1   : > { %580 = vrot.lane.b32.xlu0 %v579_v12, %s1402_s11  ;;  %v583_v17 = vmul.f32 %v579_v12, %v501_v16 }
 0x413   : > { %v581_v14 = vpop.permute.xlu0 %580 }
 0x414   : > { %v582_v4 = vmul.f32 %v581_v14, %v579_v12 }
 0x416   : > { %584 = vrot.lane.b32.xlu1 %v582_v4, %s1404_s12 }
 0x41a   : > { %596 = vperm.xlu1 %1287, %v594_v15  }
 0x488   : > { %v585_v18 = vpop.permute.xlu1 %584 }
 0x489   : > { %v586_v19 = vadd.f32 %v585_v18, %v583_v17 }
 0x48b   : > { %587 = vrot.lane.b32.xlu0 %v586_v19, %s1402_s11 }
 0x499   : > { %v597_v21 = vpop.permute.xlu1 %596 }
 0x49a   : > { %vm598_vm8 = vcmp.eq.s32.totalorder %v597_v21, 1 }
 0x49b   : > { %v600_v38 = vsel %vm598_vm8, %v586_v19, %v501_v16 }
 0x4fd   : > { %v588_v20 = vpop.permute.xlu0 %587 }
 0x4fe   : > { %1298 = vtanh.f32 %v588_v20 }
 0x508   : > { %v1299_v22 = vpop.eup %1298 }
 0x509   : > { %v590_v23 = vmul.f32 %v1299_v22, %v579_v12 }
 0x50b   : > { %v599_v24 = vsel %vm598_vm8, %v590_v23, %v500_v3 }
 0x50c   : > { %1102 = vmatmul.mubr.f32.vlgmr.msra.gmra.mrb[2].mxu1 %v599_v24 }
 0x5df   : > { %v669_v25 = vpop.f32.mrb[2].mxu1 }
 0x5e0   : > { %v673_v26 = vadd.f32 %v669_v25, %v1599_v33  ;;  %v1103_v27 = vpop.f32.mrb[3].mxu1  ;;  %v693_v33 = vsel %vm692_vm9, 1, %v1403_v53 }
 0x5e2   : > { %v674_v28 = vmul.f32 %v673_v26, %v1609_v44 }
 0x5e4   : > { %1300 = vtanh.f32 %v674_v28 }
 0x5ee   : > { %v1301_v29 = vpop.eup %1300 }
 0x5ef   : > { %v676_v30 = vmul.f32 0.5, %v1301_v29 }
 0x5f1   : > { %v677_v31 = vadd.f32 0.5, %v676_v30 }
 0x5f3   : > { %v678_v32 = vsel %vm1603_vm4, %v1301_v29, %v677_v31 }
 0x5f4   : > { %679 = vrot.lane.b32.xlu0 %v678_v32, %s1402_s11  ;;  %v682_v39 = vmul.f32 %v678_v32, %v600_v38 }
 0x666   : > { %v680_v35 = vpop.permute.xlu0 %679 }
 0x667   : > { %v681_v37 = vmul.f32 %v680_v35, %v678_v32 }
 0x669   : > { %683 = vrot.lane.b32.xlu1 %v681_v37, %s1404_s12 }
 0x66d   : > { %695 = vperm.xlu1 %1287, %v693_v33  }
 0x6db   : > { %v684_v40 = vpop.permute.xlu1 %683 }
 0x6dc   : > { %v685_v41 = vadd.f32 %v684_v40, %v682_v39 }
 0x6de   : > { %686 = vrot.lane.b32.xlu0 %v685_v41, %s1402_s11 }
 0x6ec   : > { %v696_v45 = vpop.permute.xlu1 %695 }
 0x6ed   : > { %vm697_vm10 = vcmp.eq.s32.totalorder %v696_v45, 1 }
 0x750   : > { %v687_v43 = vpop.permute.xlu0 %686 }
 0x751   : > { %1302 = vtanh.f32 %v687_v43 }
 0x75b   : > { %v1303_v46 = vpop.eup %1302 }
 0x75c   : > { %v689_v47 = vmul.f32 %v1303_v46, %v678_v32 }
 0x75e   : > { %v698_v48 = vsel %vm697_vm10, %v689_v47, %v599_v24 }
 0x75f   : > { %1137 = vmatmul.mubr.f32.vlgmr.msra.gmra.mrb[6].mxu0 %v698_v48 }
 0x832   : > { %v768_v49 = vpop.f32.mrb[6].mxu0 }
 0x833   : > { %v772_v50 = vadd.f32 %v768_v49, %v1601_v36  ;;  %v1138_v51 = vpop.f32.mrb[7].mxu0  ;;  %v792_v36 = vsel %vm791_vm11, 1, %v1403_v53 }
 0x835   : > { %v773_v52 = vmul.f32 %v772_v50, %v1609_v44  ;;  %v699_v44 = vsel %vm697_vm10, %v685_v41, %v600_v38 }
 0x837   : > { %1304 = vtanh.f32 %v773_v52 }
 0x841   : > { %v1305_v54 = vpop.eup %1304 }
 0x842   : > { %v775_v55 = vmul.f32 0.5, %v1305_v54 }
 0x844   : > { %v776_v56 = vadd.f32 0.5, %v775_v55 }
 0x846   : > { %v777_v58 = vsel %vm1603_vm4, %v1305_v54, %v776_v56 }
 0x847   : > { %778 = vrot.lane.b32.xlu0 %v777_v58, %s1402_s11  ;;  %v781_v62 = vmul.f32 %v777_v58, %v699_v44 }
 0x8b9   : > { %v779_v60 = vpop.permute.xlu0 %778 }
 0x8ba   : > { %v780_v61 = vmul.f32 %v779_v60, %v777_v58 }
 0x8bc   : > { %782 = vrot.lane.b32.xlu1 %v780_v61, %s1404_s12 }
 0x8c0   : > { %794 = vperm.xlu1 %1287, %v792_v36  }
 0x92e   : > { %v783_v63 = vpop.permute.xlu1 %782 }
 0x92f   : > { %v784_v0 = vadd.f32 %v783_v63, %v781_v62 }
 0x931   : > { %785 = vrot.lane.b32.xlu0 %v784_v0, %s1402_s11 }
 0x93f   : > { %v795_v42 = vpop.permute.xlu1 %794 }
 0x940   : > { %vm796_vm12 = vcmp.eq.s32.totalorder %v795_v42, 1 }
 0x941   : > { %v798_v1 = vsel %vm796_vm12, %v784_v0, %v699_v44 }
 0x942   : > { %800 = vst [vmem:[#allocation3] sm:$0xff] %v798_v1 }
 0x9a3   : > { %v786_v2 = vpop.permute.xlu0 %785 }
 0x9a4   : > { %1306 = vtanh.f32 %v786_v2 }
 0x9ae   : > { %v1307_v3 = vpop.eup %1306 }
 0x9af   : > { %v788_v57 = vmul.f32 %v1307_v3, %v777_v58 }
 0x9b1   : > { %v797_v5 = vsel %vm796_vm12, %v788_v57, %v698_v48 }
 0x9b2   : > { %799 = vst [vmem:[#allocation2] sm:$0xff] %v797_v5 }
 0x9b3 PF: > { %p917_p8 = scmp.ne.s32.totalorder %s1384_s23, 1 }
 0x9b5   : > { %804 = sbr.rel (%p917_p8) target bundleno = 2492 (0x9bc), region = 56 }
 0x9b9   : > { %v805_v53 = vld [vmem:[#allocation2] sm:$0xff] (!%p917_p8) }
 0x9ba   : > { %806 = vst [vmem:[#allocation10] sm:$0xff] (!%p917_p8), %v805_v53 }
 0x9bc PF: > { %p1683_p10 = scmp.eq.s32.totalorder %s899_s0, 1  ;;  %s1405_s19 = smov [#allocation10]  }
 0x9bd   : > { %s816_s20 = sshll.u32 %s1405_s19, 4  ;;  %s817_s20 = int_to_ptr.vmem [resolvable:$true] %s816_s20 }
 0x9be   : > { %s1336_s21 = scalar_lea.vmem %s817_s20, 128  ;;  %p1343_p0 = scmp.lt.s32.totalorder %s817_s20, %s817_s20 }
 0x9bf   : > { %p1337_p11 = scmp.ne.s32.totalorder %s817_s20, %s1336_s21  ;;  %p1344_p1 = scmp.lt.s32.totalorder %s1336_s21, %s1336_s21 }
 0x9c1   : > { %p1338_p12 = pnand %p1337_p11, %p1683_p10  ;;  %p1345_p2 = por %p1344_p1, %p1343_p0 }
 0x9c3   : > { %p1339_p13 = pneg %p1338_p12 }
 0x9c5   : > { %p1346_p5 = pnand %p1345_p2, %p1339_p13 }
 0x9c7   : > { %1349 = shalt.err (!%p1346_p5)
}
 0x9c8   : > { %s1350_s0 = scalar_lea.hbm %s1724_s6, 128 }
 0x9c9   : > { %p1351_p7 = scmp.ne.s32.totalorder %s1724_s6, %s1350_s0  ;;  %p1356_p4 = scmp.lt.u32.totalorder %s1350_s0, %s1724_s6 }
 0x9cb   : > { %p1352_p9 = pnand %p1351_p7, %p1683_p10 }
 0x9cd   : > { %p1353_p3 = pneg %p1352_p9 }
 0x9cf   : > { %p1358_p6 = pnand %p1356_p4, %p1353_p3 }
 0x9d1   : > { %1361 = shalt.err (!%p1358_p6)
}
 0x9d2   : > { %1240 = dma.vmem_to_hbm [thread:$0]  (%p1683_p10), %s817_s20, 128, %s1724_s6, [#allocation9]  }
 0x9d3   : > { %1379 = dma.done.wait (%p1683_p10), [#allocation9], 128  }
 0x9d4   : > { %1381 = vsyncadd (%p1683_p10), [#allocation9], 4294967168 }
 0x9d5 PF: > { %s19_s25 = sadd.s32 1, %s1392_s25   ;;  %s1736_s23 = smov %s1388_s24 }
 0x9d6   : > { %p16_p8 = scmp.ge.s32.totalorder %s19_s25, 4   ;;  %s1737_s24 = smov %s1739_s26 }
 0x9d8   :  { %18 = sbr.rel (!%p16_p8) target bundleno = 5 (0x5), region = 91 }
 0x9df   :  { %829 = vsyncpa [#allocation8], 1 }
 0x9e0   :  { %831 = vsyncpa [#allocation8 + $0x1], 1 }
 0x9e1   :  { %832 = vsyncpa [#allocation9], 1 }
 0x9e2   :  { %834 = vsyncpa [#allocation9 + $0x1], 1 }

</bundles_post_ra>
